<compile_context>
chip_gen: v7x
topology: tpu7x:2x2x1
jax: 0.10.0
libtpu: 0.0.40
codegen_flags: <defaults>
</compile_context>

<pallas_src>
import math
import functools

import jax
import jax.numpy as jnp
from jax.experimental import pallas as pl
from jax.experimental.pallas import tpu as pltpu

PI = 3.141592          # truncated pi, matches the PyTorch source
EPS = 1e-4
K_SIG = 0.3
C_SIG = (1.0 + math.exp(-PI / (2 * K_SIG))) / (1.0 - math.exp(-PI / (2 * K_SIG)))


def _acos_f32(y):
    """float32 arccos from sqrt/mul/add/select only (Cephes asinf/acosf).

    Valid for |y| <= 1 (inputs are clamped before this is called). Accuracy is
    a few f32 ulps, so it tracks torch.acos to ~1e-6 absolute.
    """
    a = jnp.abs(y)
    big = a > 0.5
    z = jnp.where(big, 0.5 * (1.0 - a), a * a)
    t = jnp.where(big, jnp.sqrt(z), a)
    p = ((((4.2163199048e-2 * z + 2.4181311049e-2) * z + 4.5470025998e-2) * z
          + 7.4953002686e-2) * z + 1.6666752422e-1)
    asin_t = t + t * z * p                                           # asin(t)
    acos_a = jnp.where(big, 2.0 * asin_t, 0.5 * math.pi - asin_t)    # acos(|y|)
    return jnp.where(y < 0.0, math.pi - acos_a, acos_a)


def _make_hsn_linear_kernel(operator: str, has_bias: bool):
    """Build the Pallas kernel body for a static operator string."""
    upper = 1.0 - EPS
    lower = -1.0 + EPS

    def body(x_ref, w_ref, b_ref, o_ref):
        # Operands arrive pre-normalized / pre-scaled / pre-cast from the
        # wrapper; accumulation is always f32 on the MXU.
        y = jnp.dot(x_ref[...], w_ref[...], preferred_element_type=jnp.float32)
        if has_bias:
            y = y + b_ref[...].astype(jnp.float32)        # bias pre-scaled by 1/wnorm

        if operator in ('w_linear', 'w_sigmoid'):
            # Soft clamp (per the PyTorch source).  Divides are routed through
            # the EUP approximate reciprocal plus one Newton-Raphson refinement
            # (~f32 accurate) so the VALU slot only sees mul/add.
            def _div(num, den):
                r = pl.reciprocal(den, approx=True)
                r = r * (2.0 - den * r)
                return num * r
            y = jnp.where(y >= upper, _div(y, y + EPS) - EPS, y)
            y = jnp.where(y <= lower, _div(y, y - EPS) * -1.0 + EPS, y)
        elif operator in ('linear', 'sigmoid'):
            y = jnp.clip(y, lower, upper)                 # hard clip

        if operator in ('linear', 'w_linear'):
            y = -0.63662 * _acos_f32(y) + 1.0
        elif operator in ('sigmoid', 'w_sigmoid'):
            # C*(1-e^t)/(1+e^t) == -C*tanh(t/2): one EUP tanh replaces an EUP
            # exp plus a full-tile VALU divide.
            t = _acos_f32(y) * (1.0 / K_SIG) - PI / (2.0 * K_SIG)
            y = -C_SIG * jnp.tanh(0.5 * t)
        # 'none' / 'cosine' / 'w_cosine': nothing left (wnorm folded into W).

        o_ref[...] = y.astype(o_ref.dtype)

    if has_bias:
        return body
    return lambda x_ref, w_ref, o_ref: body(x_ref, w_ref, None, o_ref)


def prepare_hsn_params(weight, bias=None, *, operator: str = 'none',
                       matmul_dtype=jnp.bfloat16):
    """One-time weight transform: transpose to (K, N), fold 1/wnorm into W and
    bias, cast to the matmul dtype.  Compute once and cache outside the hot
    forward path (it is a full N*K pass otherwise repeated every call)."""
    N, K = weight.shape
    # HSNLinear builds nn.Linear(bias=False) for the w_* operators, so any bias
    # passed in is (silently, as in PyTorch) dropped for those.
    has_bias = (bias is not None) and (not operator.startswith('w'))
    w32 = weight.astype(jnp.float32)
    if operator != 'none':
        # (xn @ W.T + b) / wnorm == xn @ (W.T * inv_wnorm) + b * inv_wnorm.
        inv_wnorm = jax.lax.rsqrt(jnp.sum(w32 * w32, axis=1) + EPS)      # (N,)
        w_t = w32.T * inv_wnorm[None, :]                                 # (K, N)
        b_row = (bias.astype(jnp.float32) * inv_wnorm).reshape(1, N) if has_bias else None
    else:
        w_t = w32.T
        b_row = bias.astype(jnp.float32).reshape(1, N) if has_bias else None
    # bf16 weight storage: native MXU rate + half the weight DMA bytes.
    # TODO(synk): on v7x, fp8 weight storage is viable for the non-acos
    # operators ('none'/'cosine'/'w_cosine') for another 2x on weight DMA.
    return w_t.astype(matmul_dtype), b_row


@functools.partial(
    jax.jit,
    static_argnames=("operator", "tile_b", "tile_n", "out_dtype", "vmem_limit_bytes"))
def hsn_linear_apply(x, w_t, b_row=None, *, operator: str = 'none',
                     tile_b: int = 256, tile_n: int = 512,
                     out_dtype=jnp.float32, vmem_limit_bytes=None):
    """Pallas-backed HSNLinear forward on prepared params.

    x:     (B, K) float32
    w_t:   (K, N) pre-transposed / pre-scaled / pre-cast weight (from prepare)
    b_row: (1, N) pre-scaled bias or None
    """
    B, K = x.shape
    Kw, N = w_t.shape
    assert Kw == K
    has_bias = b_row is not None
    matmul_dtype = w_t.dtype

    # Hoisted input normalization + cast: done once per forward here instead
    # of once per grid step inside the kernel, and x is streamed already in the
    # matmul dtype (halves re-streamed x bytes when bf16).
    if not operator.startswith('w'):
        x32 = x.astype(jnp.float32)
        inv_xn = jax.lax.rsqrt(jnp.sum(x32 * x32, axis=-1, keepdims=True) + EPS)
        x_stream = (x32 * inv_xn).astype(matmul_dtype)
    else:
        # No bias for w_* operators: (x/||x|| @ W) * ||x|| == x @ W, so the
        # normalization cancels exactly and is skipped.
        x_stream = x.astype(matmul_dtype)

    tb = min(tile_b, B)
    tn = min(tile_n, N)
    assert B % tb == 0 and N % tn == 0, "B and N must divide the chosen tiles"
    nb, nn = B // tb, N // tn

    # Operand-residency heuristic: the block whose index only changes on the
    # OUTER grid axis stays resident in VMEM across the inner axis, so total
    # HBM traffic ~ |resident| + n_outer_tiles * |streamed|.  Re-stream the
    # smaller operand.
    x_bytes = B * K * jnp.dtype(matmul_dtype).itemsize
    w_bytes = K * N * jnp.dtype(matmul_dtype).itemsize
    traffic_w_resident = nn * x_bytes + w_bytes      # grid (N, B): B innermost
    traffic_x_resident = x_bytes + nb * w_bytes      # grid (B, N): N innermost
    if traffic_w_resident <= traffic_x_resident:
        grid = (nn, nb)                              # weight tile resident
        x_map = lambda j, i: (i, 0)
        w_map = lambda j, i: (0, j)
        b_map = lambda j, i: (0, j)
        o_map = lambda j, i: (i, j)
    else:
        grid = (nb, nn)                              # x tile resident
        x_map = lambda i, j: (i, 0)
        w_map = lambda i, j: (0, j)
        b_map = lambda i, j: (0, j)
        o_map = lambda i, j: (i, j)

    in_specs = [
        pl.BlockSpec((tb, K), x_map),    # x tile, full K per row block
        pl.BlockSpec((K, tn), w_map),    # weight tile (pre-transposed/scaled)
        # TODO(synk): on v7x (64 MiB VMEM) consider pipeline_mode=pl.Buffered(1)
        # on the resident operand and/or a K grid axis + f32 accumulator scratch
        # for very large K.
    ]
    args = [x_stream, w_t]
    if has_bias:
        in_specs.append(pl.BlockSpec((1, tn), b_map))
        args.append(b_row)

    kernel = _make_hsn_linear_kernel(operator, has_bias)

    cp_kwargs = dict(dimension_semantics=("parallel", "parallel"))
    if vmem_limit_bytes is not None:
        # e.g. ~64-96 MiB on v6e keeps large full-K tiles double-buffered.
        cp_kwargs["vmem_limit_bytes"] = vmem_limit_bytes

    return pl.pallas_call(
        kernel,
        out_shape=jax.ShapeDtypeStruct((B, N), out_dtype),
        grid_spec=pltpu.PrefetchScalarGridSpec(
            num_scalar_prefetch=0,
            grid=grid,
            in_specs=in_specs,
            out_specs=pl.BlockSpec((tb, tn), o_map),
        ),
        compiler_params=pltpu.CompilerParams(**cp_kwargs),
    )(*args)


def hsn_linear(x, weight, bias=None, *, operator: str = 'none',
               tile_b: int = 256, tile_n: int = 512,
               matmul_dtype=jnp.bfloat16, out_dtype=jnp.float32,
               vmem_limit_bytes=None):
    """Convenience wrapper: prepare + apply (prefer caching prepare's output)."""
    w_t, b_row = prepare_hsn_params(weight, bias, operator=operator,
                                    matmul_dtype=matmul_dtype)
    return hsn_linear_apply(x, w_t, b_row, operator=operator,
                            tile_b=tile_b, tile_n=tile_n,
                            out_dtype=out_dtype,
                            vmem_limit_bytes=vmem_limit_bytes)


def hsn_linear_ref(x, weight, bias, operator: str = 'none'):
    """Plain-JAX reference mirroring the PyTorch forward (for verification)."""
    upper = 1.0 - EPS
    lower = -1.0 + EPS
    has_bias = not operator.startswith('w')

    wnorm = jnp.sqrt(jnp.sum(weight ** 2, axis=1, keepdims=True) + EPS).T  # (1, N)
    xnorm = jnp.sqrt(jnp.sum(x ** 2, axis=-1) + EPS).reshape(-1, 1)        # (B, 1)
    xh = x / xnorm
    y = jnp.dot(xh, weight.T, precision=jax.lax.Precision.HIGHEST)
    if has_bias:
        y = y + bias

    if operator == 'w_linear':
        y = y * xnorm
        y = y / wnorm
        y = jnp.where(y >= upper, y / (y + EPS) - EPS, y)
        y = jnp.where(y <= lower, y / (y - EPS) * -1.0 + EPS, y)
        y = -0.63662 * jnp.arccos(y) + 1.0
    elif operator == 'w_cosine':
        y = y * xnorm
        y = y / wnorm
    elif operator == 'w_sigmoid':
        y = y * xnorm
        y = y / wnorm
        y = jnp.where(y >= upper, y / (y + EPS) - EPS, y)
        y = jnp.where(y <= lower, y / (y - EPS) * -1.0 + EPS, y)
        e = jnp.exp(jnp.arccos(y) / K_SIG - PI / (2 * K_SIG))
        y = C_SIG * (1.0 - e) / (1.0 + e)
    elif operator == 'linear':
        y = y / wnorm
        y = jnp.clip(y, lower, upper)
        y = -0.63662 * jnp.arccos(y) + 1.0
    elif operator == 'cosine':
        y = y / wnorm
    elif operator == 'sigmoid':
        y = y / wnorm
        y = jnp.clip(y, lower, upper)
        e = jnp.exp(jnp.arccos(y) / K_SIG - PI / (2 * K_SIG))
        y = C_SIG * (1.0 - e) / (1.0 + e)
    # operator == 'none': plain (normalized-input) linear output.
    return y


if __name__ == "__main__":
    key = jax.random.PRNGKey(0)
    kx, kw, kb = jax.random.split(key, 3)

    B, in_features, out_features = 512, 128, 256

    # Deterministic nn.Linear-style init (U(-1/sqrt(in), 1/sqrt(in))).
    bound = 1.0 / math.sqrt(in_features)
    x = jax.random.normal(kx, (B, in_features), dtype=jnp.float32)
    weight = jax.random.uniform(kw, (out_features, in_features),
                                minval=-bound, maxval=bound, dtype=jnp.float32)
    bias = jax.random.uniform(kb, (out_features,),
                              minval=-bound, maxval=bound, dtype=jnp.float32)

    all_ops = ("none", "cosine", "linear", "sigmoid",
               "w_cosine", "w_linear", "w_sigmoid")

    # --- exact path: f32 MXU operands, tiles 256x128 (exercises the
    #     "x resident / W streamed" grid ordering) ----------------------------
    # w_linear / w_sigmoid use a soft clamp that is DISCONTINUOUS at +/-(1-eps):
    # ulp-level matmul differences can flip the branch for an element sitting
    # exactly at the threshold, giving a local error of up to ~1e-2 after the
    # arccos amplification, hence the looser tolerances for those two ops.
    f32_tol = {"w_linear": 1e-2, "w_sigmoid": 2e-2,
               "linear": 5e-4, "sigmoid": 5e-4}
    for op in all_ops:
        w_t, b_row = prepare_hsn_params(weight, bias, operator=op,
                                        matmul_dtype=jnp.float32)
        out = jax.block_until_ready(
            hsn_linear_apply(x, w_t, b_row, operator=op, tile_b=256, tile_n=128))
        ref = hsn_linear_ref(x, weight, bias, operator=op)
        assert out.shape == (B, out_features)
        tol = f32_tol.get(op, 1e-4)
        assert jnp.allclose(out, ref, atol=tol, rtol=tol), f"f32 mismatch for {op}"

    # --- fast path: bf16 streamed operands, f32 accumulate + f32 epilogue,
    #     tiles 128x256 (exercises the "W resident / x streamed" ordering) ----
    # arccos near +/-1 amplifies bf16 matmul error ~70x, so the unnormalized
    # w_linear / w_sigmoid branches are validated on the f32 path only.
    bf16_ops = ("none", "cosine", "linear", "sigmoid", "w_cosine")
    for op in bf16_ops:
        w_t, b_row = prepare_hsn_params(weight, bias, operator=op,
                                        matmul_dtype=jnp.bfloat16)
        out = jax.block_until_ready(
            hsn_linear_apply(x, w_t, b_row, operator=op, tile_b=128, tile_n=256))
        ref = hsn_linear_ref(x, weight, bias, operator=op)
        assert jnp.allclose(out, ref, atol=2.5e-2, rtol=2.5e-2), f"bf16 mismatch for {op}"

    # --- bf16 output writeback option (halves the B*N output bytes) ----------
    w_t, b_row = prepare_hsn_params(weight, bias, operator="cosine",
                                    matmul_dtype=jnp.bfloat16)
    out_bf16 = jax.block_until_ready(
        hsn_linear_apply(x, w_t, b_row, operator="cosine",
                         tile_b=128, tile_n=256, out_dtype=jnp.bfloat16))
    ref = hsn_linear_ref(x, weight, bias, operator="cosine")
    assert out_bf16.dtype == jnp.bfloat16
    assert jnp.allclose(out_bf16.astype(jnp.float32), ref, atol=3e-2, rtol=3e-2)

    print("KERNEL_OK")
</pallas_src>

<mosaic_0001>
module attributes {stable_mosaic.version = 11 : i64} {
  func.func @body(%arg0: i32, %arg1: i32, %arg2: memref<256x128xf32, #tpu.memory_space<vmem>>, %arg3: memref<128x128xf32, #tpu.memory_space<vmem>>, %arg4: memref<1x128xf32, #tpu.memory_space<vmem>>, %arg5: memref<256x128xf32, #tpu.memory_space<vmem>>) attributes {dimension_semantics = [#tpu.dimension_semantics<parallel>, #tpu.dimension_semantics<parallel>], iteration_bounds = array<i64: 2, 2>, scalar_prefetch = 0 : i64, scratch_operands = 0 : i64, tpu.core_type = #tpu.core_type<tc>, window_params = [{transform_indices = @transform_0, window_bounds = array<i64: 256, 128>}, {transform_indices = @transform_1, window_bounds = array<i64: 128, 128>}, {transform_indices = @transform_2, window_bounds = array<i64: 1, 128>}, {transform_indices = @transform_3, window_bounds = array<i64: 256, 128>}]} {
    %c0 = arith.constant 0 : index
    %c0_0 = arith.constant 0 : index
    %0 = vector.load %arg2[%c0, %c0_0] : memref<256x128xf32, #tpu.memory_space<vmem>>, vector<256x128xf32>
    %c0_1 = arith.constant 0 : index
    %c0_2 = arith.constant 0 : index
    %1 = vector.load %arg3[%c0_1, %c0_2] : memref<128x128xf32, #tpu.memory_space<vmem>>, vector<128x128xf32>
    %cst = arith.constant dense<0.000000e+00> : vector<256x128xf32>
    %2 = tpu.matmul %0, %1, %cst {dimension_numbers = #tpu.dot_dimension_numbers<[1], [0], [0], [1], [0, 0, 1, 1], [], []>} : vector<256x128xf32>, vector<128x128xf32>, vector<256x128xf32> -> vector<256x128xf32>
    %c0_3 = arith.constant 0 : index
    %c0_4 = arith.constant 0 : index
    %3 = vector.load %arg4[%c0_3, %c0_4] : memref<1x128xf32, #tpu.memory_space<vmem>>, vector<1x128xf32>
    %4 = vector.broadcast %3 : vector<1x128xf32> to vector<256x128xf32>
    %5 = arith.addf %2, %4 : vector<256x128xf32>
    %c0_5 = arith.constant 0 : index
    %c0_6 = arith.constant 0 : index
    %6 = vector.load %arg5[%c0_5, %c0_6] : memref<256x128xf32, #tpu.memory_space<vmem>>, vector<256x128xf32>
    tpu.vector_store %arg5[%c0_5, %c0_6], %5 {strides = array<i32>} : memref<256x128xf32, #tpu.memory_space<vmem>>, vector<256x128xf32>,
    return
  }
  func.func @transform_0(%arg0: i32, %arg1: i32) -> (i32, i32) {
    %c0_i32 = arith.constant 0 : i32
    %c0_i32_0 = arith.constant 0 : i32
    return %arg0, %c0_i32 : i32, i32
  }
  func.func @transform_1(%arg0: i32, %arg1: i32) -> (i32, i32) {
    %c0_i32 = arith.constant 0 : i32
    %c0_i32_0 = arith.constant 0 : i32
    return %c0_i32, %arg1 : i32, i32
  }
  func.func @transform_2(%arg0: i32, %arg1: i32) -> (i32, i32) {
    %c0_i32 = arith.constant 0 : i32
    %c0_i32_0 = arith.constant 0 : i32
    return %c0_i32, %arg1 : i32, i32
  }
  func.func @transform_3(%arg0: i32, %arg1: i32) -> (i32, i32) {
    %c0_i32 = arith.constant 0 : i32
    return %arg0, %arg1 : i32, i32
  }
}

</mosaic_0001>

<bundles_post_ra>
// kernel: hsn_linear_apply.1
= control target key start
LH: loop header
LB: loop body
LE: loop exit
PB: predicated region body
PF: predicated region fallthrough
CT: control target
= control target key end

     0   :  { %8 = vsyncpa [#allocation4], 0  ;;  %s1486_s0 = inlined_call_operand.vmem [shape: f32[512,128], index: 0, kind: input, shape index: {}]   ;;  %s1487_s1 = inlined_call_operand.vmem [shape: f32[128,256], index: 1, kind: input, shape index: {}]   ;;  %s1488_s2 = inlined_call_operand.vmem [shape: f32[1,256], index: 2, kind: input, shape index: {}]   ;;  %s1489_s3 = inlined_call_operand.hbm [shape: f32[512,256], index: 3, kind: output, shape index: {}]  }
   0x1   :  { %10 = vsyncpa [#allocation4 + $0x1], 0  ;;  %s1165_s12 = smov 0   ;;  %s1167_s13 = smov 0  }
   0x2   :  { %s1169_s14 = smov 0   ;;  %s1171_s15 = smov 0  }
   0x3   :  { %s1173_s16 = smov 0   ;;  %s1175_s17 = smov 0  }
   0x4   :  { %s1177_s18 = smov 0   ;;  %s1179_s19 = smov 0  }
   0x5   :  { %s1181_s20 = smov 0   ;;  %s1183_s21 = smov 0  }
   0x6 LB: > { %s744_s22 = sadd.s32 4294967295, %s1139_s21   ;;  %s745_s23 = sadd.s32 4294967294, %s1139_s21   ;;  %s1139_s21 = sphi %s1183_s21, %s16_s21   ;;  %s1135_s20 = sphi %s1181_s20, %s1501_s20   ;;  %s1131_s19 = sphi %s1179_s19, %s1500_s19   ;;  %s1127_s18 = sphi %s1177_s18, %s1499_s18   ;;  %s1123_s17 = sphi %s1175_s17, %s1498_s17   ;;  %s1119_s16 = sphi %s1173_s16, %s1497_s16   ;;  %s1115_s15 = sphi %s1171_s15, %s1496_s15   ;;  %s1111_s14 = sphi %s1169_s14, %s1495_s14   ;;  %s1107_s13 = sphi %s1167_s13, %s1494_s13   ;;  %s1103_s12 = sphi %s1165_s12, %s1493_s12  }
   0x7   : > { %s25_s24 = sadd.s32 1, %s1131_s19  ;;  %s28_s25 = sadd.s32 1, %s1135_s20 }
   0x8   : > { %p26_p0 = scmp.ge.s32.totalorder %s25_s24, 2  ;;  %s61_s26 = sadd.s32 1, %s1119_s16 }
   0x9   : > { %p68_p1 = scmp.ne.s32.totalorder %s1119_s16, %s1115_s15  ;;  %p69_p2 = scmp.eq.s32.totalorder %s1139_s21, 0 }
   0xa   : > { %s1503_s24 = smov (%p26_p0, %s25_s24), 0  ;;  %s1505_s25 = smov (!%p26_p0, %s28_s25), %s1135_s20 }
   0xb   : > { %s58_s27 = ssub.s32 %s1131_s19, %s1503_s24  ;;  %p1228_p3 = por %p69_p2, %p68_p1 }
   0xc   : > { %p30_p4 = scmp.ge.s32.totalorder %s1505_s25, 2  ;;  %p59_p5 = scmp.eq.s32.totalorder %s58_s27, 0 }
   0xd   : > { %s115_s29 = sadd.s32 1, %s1111_s14  ;;  %p125_p6 = scmp.ne.s32.totalorder %s1111_s14, %s1107_s13 }
   0xe   : > { %s1507_s25 = smov (%p30_p4, %s1505_s25), 0  ;;  %p126_p7 = scmp.eq.s32.totalorder %s744_s22, 3 }
   0xf   : > { %s1238_s30 = scalar_select %p59_p5, %s1119_s16, %s61_s26  }
  0x10   : > { %s110_s4 = ssub.s32 %s1135_s20, %s1507_s25  ;;  %p131_p8 = scmp.ne.s32.totalorder %s1107_s13, %s1103_s12 }
  0x11   : > { %s112_s5 = sor.u32 %s110_s4, %s58_s27  ;;  %p1244_p10 = por %p126_p7, %p125_p6 }
  0x12   : > { %p113_p9 = scmp.eq.s32.totalorder %s112_s5, 0  ;;  %p132_p11 = scmp.eq.s32.totalorder %s745_s23, 3 }
  0x13   : > { %p747_p13 = scmp.ge.s32.totalorder %s1139_s21, 4 }
  0x14   : > { %s1249_s7 = scalar_select %p113_p9, %s1111_s14, %s115_s29  }
  0x15   : > { %p1251_p12 = por %p132_p11, %p131_p8  ;;  %148 = sbr.rel (%p747_p13) target bundleno = 40 (0x28), region = 16 }
  0x1c   : > { %160 = sbr.rel (!%p1228_p3) target bundleno = 40 (0x28), region = 24  ;;  %s162_s9 = sand.u32 (%p1228_p3), 1, %s1119_s16  }
  0x1d   : > { %s749_s10 = sshll.u32 (%p1228_p3), %s1131_s19, 3  ;;  %s748_s11 = sshll.u32 (%p1228_p3), %s162_s9, 7 }
  0x1e   : > { %s1263_s23 = scalar_lea.vmem (%p1228_p3), %s1487_s1, %s749_s10  ;;  %s164_s27 = scalar_lea.vmem (%p1228_p3), [#allocation2], %s748_s11 }
  0x1f   : > { %v224_v0 = vld [vmem:[%s1263_s23] sm:$0xff] (%p1228_p3)  ;;  %v226_v1 = vld [vmem:[%s1263_s23 + $0x10] sm:$0xff] (%p1228_p3) }
  0x20   : > { %v228_v2 = vld [vmem:[%s1263_s23 + $0x20] sm:$0xff] (%p1228_p3)  ;;  %225 = vst [vmem:[%s164_s27] sm:$0xff] (%p1228_p3), %v224_v0  ;;  %227 = vst [vmem:[%s164_s27 + $0x8] sm:$0xff] (%p1228_p3), %v226_v1  ;;  %v230_v3 = vld [vmem:[%s1263_s23 + $0x30] sm:$0xff] (%p1228_p3) }
  0x21   : > { %229 = vst [vmem:[%s164_s27 + $0x10] sm:$0xff] (%p1228_p3), %v228_v2  ;;  %v232_v4 = vld [vmem:[%s1263_s23 + $0x40] sm:$0xff] (%p1228_p3)  ;;  %v234_v5 = vld [vmem:[%s1263_s23 + $0x50] sm:$0xff] (%p1228_p3)  ;;  %231 = vst [vmem:[%s164_s27 + $0x18] sm:$0xff] (%p1228_p3), %v230_v3 }
  0x22   : > { %233 = vst [vmem:[%s164_s27 + $0x20] sm:$0xff] (%p1228_p3), %v232_v4  ;;  %235 = vst [vmem:[%s164_s27 + $0x28] sm:$0xff] (%p1228_p3), %v234_v5  ;;  %v236_v6 = vld [vmem:[%s1263_s23 + $0x60] sm:$0xff] (%p1228_p3)  ;;  %v238_v7 = vld [vmem:[%s1263_s23 + $0x70] sm:$0xff] (%p1228_p3) }
  0x23   : > { %v240_v8 = vld [vmem:[%s1263_s23 + $0x80] sm:$0xff]  ;;  %237 = vst [vmem:[%s164_s27 + $0x30] sm:$0xff] %v236_v6  ;;  %239 = vst [vmem:[%s164_s27 + $0x38] sm:$0xff] %v238_v7  ;;  %v242_v9 = vld [vmem:[%s1263_s23 + $0x90] sm:$0xff] }
  0x24   : > { %241 = vst [vmem:[%s164_s27 + $0x40] sm:$0xff] %v240_v8  ;;  %v244_v10 = vld [vmem:[%s1263_s23 + $0xa0] sm:$0xff]  ;;  %v246_v11 = vld [vmem:[%s1263_s23 + $0xb0] sm:$0xff]  ;;  %243 = vst [vmem:[%s164_s27 + $0x48] sm:$0xff] %v242_v9 }
  0x25   : > { %245 = vst [vmem:[%s164_s27 + $0x50] sm:$0xff] %v244_v10  ;;  %247 = vst [vmem:[%s164_s27 + $0x58] sm:$0xff] %v246_v11  ;;  %v248_v12 = vld [vmem:[%s1263_s23 + $0xc0] sm:$0xff]  ;;  %v250_v13 = vld [vmem:[%s1263_s23 + $0xd0] sm:$0xff] }
  0x26   : > { %v252_v14 = vld [vmem:[%s1263_s23 + $0xe0] sm:$0xff]  ;;  %249 = vst [vmem:[%s164_s27 + $0x60] sm:$0xff] %v248_v12  ;;  %251 = vst [vmem:[%s164_s27 + $0x68] sm:$0xff] %v250_v13  ;;  %v254_v15 = vld [vmem:[%s1263_s23 + $0xf0] sm:$0xff] }
  0x27   : > { %253 = vst [vmem:[%s164_s27 + $0x70] sm:$0xff] %v252_v14  ;;  %255 = vst [vmem:[%s164_s27 + $0x78] sm:$0xff] %v254_v15 }
  0x28 PF: > { %p750_p0 = scmp.ge.s32.totalorder %s1139_s21, 1  ;;  %p266_p1 = scmp.lt.s32.totalorder %s1139_s21, 5 }
  0x2a   : > { %p267_p2 = pnand %p750_p0, %p266_p1 }
  0x2b   : > { %s273_s28 = sand.u32 (!%p267_p2), 1, %s1115_s15   ;;  %s753_s29 = sshll.u32 (!%p267_p2), %s1127_s18, 5 }
  0x2c   : > { %270 = sbr.rel (%p267_p2) target bundleno = 340 (0x154), region = 66  ;;  %s751_s4 = sshll.u32 (!%p267_p2), %s273_s28, 7 }
  0x2d   : > { %p305_p3 = scmp.lt.s32.totalorder (!%p267_p2), %s753_s29, 63  ;;  %s1285_s5 = scalar_lea.vmem (!%p267_p2), [#allocation2], %s751_s4 }
  0x2e   : > { %v346_v16 = vld [vmem:[%s1285_s5] sm:$0xff] (!%p267_p2)  ;;  %v347_v17 = vld [vmem:[%s1285_s5 + $0x8] sm:$0xff] (!%p267_p2)  ;;  %v348_v18 = vld [vmem:[%s1285_s5 + $0x10] sm:$0xff] (!%p267_p2)  ;;  %p310_p4 = scmp.lt.s32.totalorder (!%p267_p2), %s1123_s17, 1  ;;  %s301_s26 = sand.u32 (!%p267_p2), 1, %s1107_s13  }
  0x2f   : > { %v891_v19 = vpack.c.bf16 (!%p267_p2), %v347_v17, %v346_v16  ;;  %v349_v20 = vld [vmem:[%s1285_s5 + $0x18] sm:$0xff] (!%p267_p2)  ;;  %v350_v22 = vld [vmem:[%s1285_s5 + $0x20] sm:$0xff] (!%p267_p2)  ;;  %v351_v23 = vld [vmem:[%s1285_s5 + $0x28] sm:$0xff] (!%p267_p2)  ;;  %s1141_s27 = smov (!%p267_p2), [#allocation3]  }
  0x30   : > { %v895_v21 = vpack.c.bf16 (!%p267_p2), %v349_v20, %v348_v18  ;;  %v899_v24 = vpack.c.bf16 (!%p267_p2), %v351_v23, %v350_v22  ;;  %v352_v27 = vld [vmem:[%s1285_s5 + $0x30] sm:$0xff] (!%p267_p2)  ;;  %v353_v28 = vld [vmem:[%s1285_s5 + $0x38] sm:$0xff] (!%p267_p2)  ;;  %v354_v30 = vld [vmem:[%s1285_s5 + $0x40] sm:$0xff] (!%p267_p2) }
  0x31   : > { %892 = vmatprep.subr.bf16.mxu0 (!%p267_p2), %v891_v19  ;;  %923 = vmatprep.subr.bf16.mxu1 (!%p267_p2), %v891_v19  ;;  %v903_v29 = vpack.c.bf16 (!%p267_p2), %v353_v28, %v352_v27  ;;  %v355_v31 = vld [vmem:[%s1285_s5 + $0x48] sm:$0xff] (!%p267_p2)  ;;  %v356_v33 = vld [vmem:[%s1285_s5 + $0x50] sm:$0xff] (!%p267_p2)  ;;  %v357_v34 = vld [vmem:[%s1285_s5 + $0x58] sm:$0xff] (!%p267_p2) }
  0x32   : > { %894 = vmatpush3.bf16.msra.mxu0 (!%p267_p2), %v891_v19  ;;  %931 = vmatpush3.bf16.msra.mxu1 (!%p267_p2), %v891_v19  ;;  %v907_v32 = vpack.c.bf16 (!%p267_p2), %v355_v31, %v354_v30  ;;  %v911_v35 = vpack.c.bf16 (!%p267_p2), %v357_v34, %v356_v33  ;;  %v358_v36 = vld [vmem:[%s1285_s5 + $0x60] sm:$0xff] (!%p267_p2)  ;;  %v359_v37 = vld [vmem:[%s1285_s5 + $0x68] sm:$0xff] (!%p267_p2)  ;;  %v360_v39 = vld [vmem:[%s1285_s5 + $0x70] sm:$0xff] (!%p267_p2) }
  0x33   : > { %s1509_s29 = smov (!%p305_p3, %s753_s29), 63  ;;  %896 = vmatprep.subr.bf16.mxu0 %v895_v21  ;;  %924 = vmatprep.subr.bf16.mxu1 %v895_v21  ;;  %v915_v38 = vpack.c.bf16 %v359_v37, %v358_v36  ;;  %v361_v40 = vld [vmem:[%s1285_s5 + $0x78] sm:$0xff]  ;;  %s762_s5 = sshll.u32 %s1127_s18, 6 }
  0x34   : > { %s754_s15 = sshll.u32 %s1509_s29, 3  ;;  %v919_v41 = vpack.c.bf16 %v361_v40, %v360_v39  ;;  %s752_s29 = sshll.u32 %s301_s26, 8 }
  0x35   : > { %s1296_s11 = scalar_lea.vmem %s1486_s0, %s754_s15  ;;  %s1354_s4 = scalar_lea.vmem [#allocation3], %s752_s29 }
  0x36   : > { %v314_v25 = vld [vmem:[%s1296_s11] sm:$0xff]  ;;  %898 = vmatpush3.bf16.msra.mxu0 %v895_v21  ;;  %932 = vmatpush3.bf16.msra.mxu1 %v895_v21  ;;  %v315_v42 = vld [vmem:[%s1296_s11 + $0x8] sm:$0xff]  ;;  %v316_v44 = vld [vmem:[%s1296_s11 + $0x10] sm:$0xff]  ;;  %s311_s22 = scalar_select %p310_p4, %s1123_s17, 1 }
  0x37   : > { %v330_v26 = vld [vmem:[%s1296_s11 + $0x80] sm:$0xff]  ;;  %843 = vmatprep.mubr.f32.mxu0 %v314_v25  ;;  %900 = vmatprep.subr.bf16.mxu0 %v899_v24  ;;  %v331_v43 = vld [vmem:[%s1296_s11 + $0x88] sm:$0xff]  ;;  %v332_v45 = vld [vmem:[%s1296_s11 + $0x90] sm:$0xff]  ;;  %s639_s15 = sadd.s32 %s1123_s17, %s762_s5  ;;  %s642_s17 = sshll.u32 %s1354_s4, 4  ;;  %s1418_s17 = int_to_ptr.vmem [resolvable:$true] %s642_s17 }
  0x38   : > { %867 = vmatprep.mubr.f32.mxu1 %v330_v26  ;;  %925 = vmatprep.subr.bf16.mxu1 %v899_v24  ;;  %v317_v46 = vld [vmem:[%s1296_s11 + $0x18] sm:$0xff]  ;;  %v318_v48 = vld [vmem:[%s1296_s11 + $0x20] sm:$0xff]  ;;  %v319_v50 = vld [vmem:[%s1296_s11 + $0x28] sm:$0xff]  ;;  %s312_s28 = scalar_lea.vmem %s1488_s2, %s311_s22  ;;  %s759_s18 = sshll.u32 %s639_s15, 7 }
  0x39   : > { %v333_v47 = vld [vmem:[%s1296_s11 + $0x98] sm:$0xff]  ;;  %v334_v49 = vld [vmem:[%s1296_s11 + $0xa0] sm:$0xff]  ;;  %v335_v51 = vld [vmem:[%s1296_s11 + $0xa8] sm:$0xff]  ;;  %s1428_s22 = scalar_lea.sflag [#allocation4], %s301_s26  ;;  %s1029_s23 = scalar_lea.vmem %s1418_s17, 4096 }
  0x3a   : > { %902 = vmatpush3.bf16.msra.mxu0 %v899_v24  ;;  %933 = vmatpush3.bf16.msra.mxu1 %v899_v24  ;;  %v320_v52 = vld [vmem:[%s1296_s11 + $0x30] sm:$0xff]  ;;  %v321_v54 = vld [vmem:[%s1296_s11 + $0x38] sm:$0xff]  ;;  %v322_v56 = vld [vmem:[%s1296_s11 + $0x40] sm:$0xff]  ;;  %p1030_p5 = scmp.ne.s32.totalorder %s1418_s17, %s1029_s23 }
  0x3b   : > { %904 = vmatprep.subr.bf16.mxu0 %v903_v29  ;;  %926 = vmatprep.subr.bf16.mxu1 %v903_v29  ;;  %v336_v53 = vld [vmem:[%s1296_s11 + $0xb0] sm:$0xff]  ;;  %v337_v55 = vld [vmem:[%s1296_s11 + $0xb8] sm:$0xff]  ;;  %v338_v57 = vld [vmem:[%s1296_s11 + $0xc0] sm:$0xff] }
  0x3c   : > { %v323_v58 = vld [vmem:[%s1296_s11 + $0x48] sm:$0xff]  ;;  %v324_v60 = vld [vmem:[%s1296_s11 + $0x50] sm:$0xff]  ;;  %v325_v62 = vld [vmem:[%s1296_s11 + $0x58] sm:$0xff]  ;;  %p1031_p6 = pnand %p1030_p5, %p1244_p10 }
  0x3d   : > { %v339_v59 = vld [vmem:[%s1296_s11 + $0xc8] sm:$0xff]  ;;  %v340_v61 = vld [vmem:[%s1296_s11 + $0xd0] sm:$0xff]  ;;  %v341_v63 = vld [vmem:[%s1296_s11 + $0xd8] sm:$0xff] }
  0x3e   : > { %906 = vmatpush3.bf16.msra.mxu0 %v903_v29  ;;  %934 = vmatpush3.bf16.msra.mxu1 %v903_v29  ;;  %v326_v0 = vld [vmem:[%s1296_s11 + $0x60] sm:$0xff]  ;;  %v327_v2 = vld [vmem:[%s1296_s11 + $0x68] sm:$0xff]  ;;  %v328_v4 = vld [vmem:[%s1296_s11 + $0x70] sm:$0xff]  ;;  %p1032_p7 = pneg %p1031_p6 }
  0x3f   : > { %908 = vmatprep.subr.bf16.mxu0 %v907_v32  ;;  %927 = vmatprep.subr.bf16.mxu1 %v907_v32  ;;  %v342_v1 = vld [vmem:[%s1296_s11 + $0xe0] sm:$0xff]  ;;  %v343_v3 = vld [vmem:[%s1296_s11 + $0xe8] sm:$0xff]  ;;  %v344_v5 = vld [vmem:[%s1296_s11 + $0xf0] sm:$0xff] }
  0x40   : > { %v329_v6 = vld [vmem:[%s1296_s11 + $0x78] sm:$0xff]  ;;  %v1348_v8 = vld [vmem:[%s312_s28] ss:$0 sm:$0xff]  ;;  %s1033_s28 = sshll.u32 %s1141_s27, 4  ;;  %s1034_s28 = int_to_ptr.vmem [resolvable:$false] %s1033_s28 }
  0x41   : > { %v345_v7 = vld [vmem:[%s1296_s11 + $0xf8] sm:$0xff]  ;;  %s1414_s11 = scalar_lea.hbm %s1489_s3, %s759_s18  ;;  %s1035_s29 = scalar_lea.vmem %s1034_s28, 8192 }
  0x42   : > { %910 = vmatpush3.bf16.msra.mxu0 %v907_v32  ;;  %935 = vmatpush3.bf16.msra.mxu1 %v907_v32  ;;  %p1036_p8 = scmp.lt.s32.totalorder %s1418_s17, %s1034_s28  ;;  %p1037_p9 = scmp.lt.s32.totalorder %s1035_s29, %s1029_s23 }
  0x43   : > { %912 = vmatprep.subr.bf16.mxu0 %v911_v35  ;;  %928 = vmatprep.subr.bf16.mxu1 %v911_v35 }
  0x44   : > { %p1038_p11 = por %p1037_p9, %p1036_p8 }
  0x46   : > { %914 = vmatpush3.bf16.msra.mxu0 %v911_v35  ;;  %936 = vmatpush3.bf16.msra.mxu1 %v911_v35  ;;  %p1039_p13 = pnand %p1038_p11, %p1032_p7 }
  0x47   : > { %916 = vmatprep.subr.bf16.mxu0 %v915_v38  ;;  %929 = vmatprep.subr.bf16.mxu1 %v915_v38 }
  0x4a   : > { %918 = vmatpush3.bf16.msra.mxu0 %v915_v38  ;;  %937 = vmatpush3.bf16.msra.mxu1 %v915_v38 }
  0x4b   : > { %920 = vmatprep.subr.bf16.mxu0 %v919_v41  ;;  %930 = vmatprep.subr.bf16.mxu1 %v919_v41 }
  0x4e   : > { %922 = vmatpush3.bf16.msra.mxu0 %v919_v41  ;;  %938 = vmatpush3.bf16.msra.mxu1 %v919_v41 }
  0x51   : > { %844 = vmatmul.mubr.f32.vlgmr.msra.gmra.mrb[0].mxu0 %v315_v42  ;;  %868 = vmatmul.mubr.f32.vlgmr.msra.gmra.mrb[0].mxu1 %v331_v43 }
  0x52   : > { %846 = vmatprep.mubr.f32.mxu0 %v316_v44  ;;  %870 = vmatprep.mubr.f32.mxu1 %v332_v45 }
  0x55   : > { %847 = vmatmul.mubr.f32.gmra.mrb[2].mxu0 %v317_v46  ;;  %871 = vmatmul.mubr.f32.gmra.mrb[2].mxu1 %v333_v47 }
  0x56   : > { %849 = vmatprep.mubr.f32.mxu0 %v318_v48  ;;  %873 = vmatprep.mubr.f32.mxu1 %v334_v49 }
  0x59   : > { %850 = vmatmul.mubr.f32.gmra.mrb[4].mxu0 %v319_v50  ;;  %874 = vmatmul.mubr.f32.gmra.mrb[4].mxu1 %v335_v51 }
  0x5a   : > { %852 = vmatprep.mubr.f32.mxu0 %v320_v52  ;;  %876 = vmatprep.mubr.f32.mxu1 %v336_v53 }
  0x5d   : > { %853 = vmatmul.mubr.f32.gmra.mrb[6].mxu0 %v321_v54  ;;  %877 = vmatmul.mubr.f32.gmra.mrb[6].mxu1 %v337_v55 }
  0x5e   : > { %855 = vmatprep.mubr.f32.mxu0 %v322_v56  ;;  %879 = vmatprep.mubr.f32.mxu1 %v338_v57 }
  0x61   : > { %856 = vmatmul.mubr.f32.gmra.mrb[8].mxu0 %v323_v58  ;;  %880 = vmatmul.mubr.f32.gmra.mrb[8].mxu1 %v339_v59 }
  0x62   : > { %858 = vmatprep.mubr.f32.mxu0 %v324_v60  ;;  %882 = vmatprep.mubr.f32.mxu1 %v340_v61 }
  0x65   : > { %859 = vmatmul.mubr.f32.gmra.mrb[10].mxu0 %v325_v62  ;;  %883 = vmatmul.mubr.f32.gmra.mrb[10].mxu1 %v341_v63 }
  0x66   : > { %861 = vmatprep.mubr.f32.mxu0 %v326_v0  ;;  %885 = vmatprep.mubr.f32.mxu1 %v342_v1 }
  0x69   : > { %862 = vmatmul.mubr.f32.gmra.mrb[12].mxu0 %v327_v2  ;;  %886 = vmatmul.mubr.f32.gmra.mrb[12].mxu1 %v343_v3 }
  0x6a   : > { %864 = vmatprep.mubr.f32.mxu0 %v328_v4  ;;  %888 = vmatprep.mubr.f32.mxu1 %v344_v5 }
  0x6d   : > { %865 = vmatmul.mubr.f32.gmra.mrb[14].mxu0 %v329_v6  ;;  %889 = vmatmul.mubr.f32.gmra.mrb[14].mxu1 %v345_v7 }
 0x124   : > { %v845_v9 = vpop.f32.mrb[0].mxu0  ;;  %v869_v10 = vpop.f32.mrb[0].mxu1 }
 0x125   : > { %v441_v11 = vadd.f32 %v845_v9, %v1348_v8  ;;  %v521_v12 = vadd.f32 %v869_v10, %v1348_v8  ;;  %v435_v13 = vpop.f32.mrb[1].mxu0  ;;  %v515_v14 = vpop.f32.mrb[1].mxu1 }
 0x126   : > { %v436_v15 = vadd.f32 %v1348_v8, %v435_v13  ;;  %v516_v16 = vadd.f32 %v1348_v8, %v515_v14 }
 0x127   : > { %595 = vst [vmem:[%s1354_s4 + $0x8] sm:$0xff] %v441_v11  ;;  %611 = vst [vmem:[%s1354_s4 + $0x88] sm:$0xff] %v521_v12 }
 0x128   : > { %594 = vst [vmem:[%s1354_s4] sm:$0xff] %v436_v15  ;;  %610 = vst [vmem:[%s1354_s4 + $0x80] sm:$0xff] %v516_v16  ;;  %v848_v17 = vpop.f32.mrb[2].mxu0  ;;  %v872_v18 = vpop.f32.mrb[2].mxu1 }
 0x129   : > { %v451_v19 = vadd.f32 %v848_v17, %v1348_v8  ;;  %v531_v20 = vadd.f32 %v872_v18, %v1348_v8  ;;  %v445_v21 = vpop.f32.mrb[3].mxu0  ;;  %v525_v22 = vpop.f32.mrb[3].mxu1 }
 0x12a   : > { %v446_v23 = vadd.f32 %v1348_v8, %v445_v21  ;;  %v526_v24 = vadd.f32 %v1348_v8, %v525_v22 }
 0x12b   : > { %597 = vst [vmem:[%s1354_s4 + $0x18] sm:$0xff] %v451_v19  ;;  %613 = vst [vmem:[%s1354_s4 + $0x98] sm:$0xff] %v531_v20 }
 0x12c   : > { %596 = vst [vmem:[%s1354_s4 + $0x10] sm:$0xff] %v446_v23  ;;  %612 = vst [vmem:[%s1354_s4 + $0x90] sm:$0xff] %v526_v24  ;;  %v851_v25 = vpop.f32.mrb[4].mxu0  ;;  %v875_v26 = vpop.f32.mrb[4].mxu1 }
 0x12d   : > { %v461_v27 = vadd.f32 %v851_v25, %v1348_v8  ;;  %v541_v28 = vadd.f32 %v875_v26, %v1348_v8  ;;  %v455_v29 = vpop.f32.mrb[5].mxu0  ;;  %v535_v30 = vpop.f32.mrb[5].mxu1 }
 0x12e   : > { %v456_v31 = vadd.f32 %v1348_v8, %v455_v29  ;;  %v536_v32 = vadd.f32 %v1348_v8, %v535_v30 }
 0x12f   : > { %599 = vst [vmem:[%s1354_s4 + $0x28] sm:$0xff] %v461_v27  ;;  %615 = vst [vmem:[%s1354_s4 + $0xa8] sm:$0xff] %v541_v28 }
 0x130   : > { %598 = vst [vmem:[%s1354_s4 + $0x20] sm:$0xff] %v456_v31  ;;  %614 = vst [vmem:[%s1354_s4 + $0xa0] sm:$0xff] %v536_v32  ;;  %v854_v33 = vpop.f32.mrb[6].mxu0  ;;  %v878_v34 = vpop.f32.mrb[6].mxu1 }
 0x131   : > { %v471_v35 = vadd.f32 %v854_v33, %v1348_v8  ;;  %v551_v36 = vadd.f32 %v878_v34, %v1348_v8  ;;  %v465_v37 = vpop.f32.mrb[7].mxu0  ;;  %v545_v38 = vpop.f32.mrb[7].mxu1 }
 0x132   : > { %v466_v39 = vadd.f32 %v1348_v8, %v465_v37  ;;  %v546_v40 = vadd.f32 %v1348_v8, %v545_v38 }
 0x133   : > { %601 = vst [vmem:[%s1354_s4 + $0x38] sm:$0xff] %v471_v35  ;;  %617 = vst [vmem:[%s1354_s4 + $0xb8] sm:$0xff] %v551_v36 }
 0x134   : > { %600 = vst [vmem:[%s1354_s4 + $0x30] sm:$0xff] %v466_v39  ;;  %616 = vst [vmem:[%s1354_s4 + $0xb0] sm:$0xff] %v546_v40  ;;  %v857_v41 = vpop.f32.mrb[8].mxu0  ;;  %v881_v42 = vpop.f32.mrb[8].mxu1 }
 0x135   : > { %v481_v43 = vadd.f32 %v857_v41, %v1348_v8  ;;  %v561_v44 = vadd.f32 %v881_v42, %v1348_v8  ;;  %v475_v45 = vpop.f32.mrb[9].mxu0  ;;  %v555_v46 = vpop.f32.mrb[9].mxu1 }
 0x136   : > { %v476_v47 = vadd.f32 %v1348_v8, %v475_v45  ;;  %v556_v48 = vadd.f32 %v1348_v8, %v555_v46 }
 0x137   : > { %603 = vst [vmem:[%s1354_s4 + $0x48] sm:$0xff] %v481_v43  ;;  %619 = vst [vmem:[%s1354_s4 + $0xc8] sm:$0xff] %v561_v44 }
 0x138   : > { %602 = vst [vmem:[%s1354_s4 + $0x40] sm:$0xff] %v476_v47  ;;  %618 = vst [vmem:[%s1354_s4 + $0xc0] sm:$0xff] %v556_v48  ;;  %v860_v49 = vpop.f32.mrb[10].mxu0  ;;  %v884_v50 = vpop.f32.mrb[10].mxu1 }
 0x139   : > { %v491_v51 = vadd.f32 %v860_v49, %v1348_v8  ;;  %v571_v52 = vadd.f32 %v884_v50, %v1348_v8  ;;  %v485_v53 = vpop.f32.mrb[11].mxu0  ;;  %v565_v54 = vpop.f32.mrb[11].mxu1 }
 0x13a   : > { %v486_v55 = vadd.f32 %v1348_v8, %v485_v53  ;;  %v566_v56 = vadd.f32 %v1348_v8, %v565_v54 }
 0x13b   : > { %605 = vst [vmem:[%s1354_s4 + $0x58] sm:$0xff] %v491_v51  ;;  %621 = vst [vmem:[%s1354_s4 + $0xd8] sm:$0xff] %v571_v52 }
 0x13c   : > { %604 = vst [vmem:[%s1354_s4 + $0x50] sm:$0xff] %v486_v55  ;;  %620 = vst [vmem:[%s1354_s4 + $0xd0] sm:$0xff] %v566_v56  ;;  %v863_v57 = vpop.f32.mrb[12].mxu0  ;;  %v887_v58 = vpop.f32.mrb[12].mxu1 }
 0x13d   : > { %v501_v59 = vadd.f32 %v863_v57, %v1348_v8  ;;  %v581_v60 = vadd.f32 %v887_v58, %v1348_v8  ;;  %v495_v61 = vpop.f32.mrb[13].mxu0  ;;  %v575_v62 = vpop.f32.mrb[13].mxu1 }
 0x13e   : > { %v496_v63 = vadd.f32 %v1348_v8, %v495_v61  ;;  %v576_v0 = vadd.f32 %v1348_v8, %v575_v62 }
 0x13f   : > { %607 = vst [vmem:[%s1354_s4 + $0x68] sm:$0xff] %v501_v59  ;;  %623 = vst [vmem:[%s1354_s4 + $0xe8] sm:$0xff] %v581_v60 }
 0x140   : > { %606 = vst [vmem:[%s1354_s4 + $0x60] sm:$0xff] %v496_v63  ;;  %622 = vst [vmem:[%s1354_s4 + $0xe0] sm:$0xff] %v576_v0  ;;  %v866_v1 = vpop.f32.mrb[14].mxu0  ;;  %v890_v2 = vpop.f32.mrb[14].mxu1 }
 0x141   : > { %v511_v3 = vadd.f32 %v866_v1, %v1348_v8  ;;  %v591_v4 = vadd.f32 %v890_v2, %v1348_v8  ;;  %v505_v5 = vpop.f32.mrb[15].mxu0  ;;  %v585_v6 = vpop.f32.mrb[15].mxu1 }
 0x142   : > { %v506_v7 = vadd.f32 %v1348_v8, %v505_v5  ;;  %v586_v9 = vadd.f32 %v1348_v8, %v585_v6 }
 0x143   : > { %609 = vst [vmem:[%s1354_s4 + $0x78] sm:$0xff] %v511_v3  ;;  %625 = vst [vmem:[%s1354_s4 + $0xf8] sm:$0xff] %v591_v4 }
 0x144   : > { %608 = vst [vmem:[%s1354_s4 + $0x70] sm:$0xff] %v506_v7  ;;  %624 = vst [vmem:[%s1354_s4 + $0xf0] sm:$0xff] %v586_v9 }
 0x145   : > { %1042 = shalt.err (!%p1039_p13)
}
 0x146   : > { %s1043_s26 = scalar_lea.hbm %s1414_s11, 4096  ;;  %s1047_s15 = scalar_lea.hbm %s1489_s3, 16384 }
 0x147   : > { %p1044_p0 = scmp.ne.s32.totalorder %s1414_s11, %s1043_s26  ;;  %p1048_p3 = scmp.lt.u32.totalorder %s1414_s11, %s1489_s3 }
 0x148   : > { %p1049_p4 = scmp.lt.u32.totalorder %s1047_s15, %s1043_s26  ;;  %p1051_p6 = scmp.lt.u32.totalorder %s1043_s26, %s1414_s11 }
 0x149   : > { %p1045_p1 = pnand %p1044_p0, %p1244_p10 }
 0x14a   : > { %p1050_p5 = por %p1049_p4, %p1048_p3 }
 0x14b   : > { %p1046_p2 = pneg %p1045_p1 }
 0x14c   : > { %p1052_p7 = por %p1051_p6, %p1050_p5 }
 0x14e   : > { %p1053_p8 = pnand %p1052_p7, %p1046_p2 }
 0x150   : > { %1056 = shalt.err (!%p1053_p8)
}
 0x151   : > { %s1142_s10 = smov 128   ;;  %s1143_s23 = smov 256  }
 0x152   : > { %s1144_s27 = smov 8  }
 0x153   : > { %939 = dma.vmem_to_hbm [thread:$0]  (%p1244_p10), %s1418_s17, 4096, %s1414_s11, %s1428_s22, %s1142_s10, %s1143_s23, %s1144_s27  }
 0x154 PF: > { %p945_p9 = scmp.ge.s32.totalorder %s1139_s21, 2  ;;  %s657_s28 = sand.u32 1, %s1103_s12  }
 0x155   : > { %s658_s29 = scalar_lea.sflag [#allocation4], %s657_s28 }
 0x156   : > { %p942_p11 = pnand %p945_p9, %p1251_p12 }
 0x158   : > { %1098 = dma.done.wait (!%p942_p11), %s658_s29, 4096  }
 0x159   : > { %1100 = vsyncadd (!%p942_p11), %s658_s29, 4294963200  ;;  %s16_s21 = sadd.s32 1, %s1139_s21   ;;  %s1493_s12 = smov %s1107_s13 }
 0x15a   : > { %p13_p13 = scmp.ge.s32.totalorder %s16_s21, 6   ;;  %s1494_s13 = smov %s1111_s14 }
 0x15b   : > { %s1495_s14 = smov %s1249_s7  ;;  %s1496_s15 = smov %s1119_s16 }
 0x15c   : > { %s1497_s16 = smov %s1238_s30  ;;  %s1498_s17 = smov %s1131_s19 }
 0x15d   : > { %s1499_s18 = smov %s1135_s20  ;;  %s1500_s19 = smov %s1503_s24 }
 0x15e   : > { %s1501_s20 = smov %s1507_s25  ;;  %15 = sbr.rel (!%p13_p13) target bundleno = 6 (0x6), region = 116 }
 0x165   :  { %663 = vsyncpa [#allocation4], 1 }
 0x166   :  { %665 = vsyncpa [#allocation4 + $0x1], 1 }

</bundles_post_ra>
